<compile_context>
chip_gen: v5e
topology: v5e:2x2
jax: 0.10.0
libtpu: 0.0.40
codegen_flags: <defaults>
</compile_context>

<pallas_src>
import jax
import jax.numpy as jnp
from jax import lax
from jax.experimental import pallas as pl
from jax.experimental.pallas import tpu as pltpu

EPS = 1e-5


# --------------------------------------------------------------------------- #
# kernel
# --------------------------------------------------------------------------- #
def _res_basic_kernel(x_ref, w1_ref, w2_ref, ws_ref, bias_ref, out1_ref, out2_ref):
    nb, H, WCin = x_ref.shape            # (images per step, H, W*Cin)
    WCmid = out1_ref.shape[-1]           # W*Cmid (lane-dense)
    M = nb * H                           # matmul M dimension (batch folded in)

    x = x_ref[...].reshape(M, WCin)      # bf16; contiguous merge of (nb,H) -> free

    b1 = bias_ref[0:1, :]                # BN biases (scale already folded into weights)
    b2 = bias_ref[1:2, :]
    bs = bias_ref[2:3, :]

    # Row-validity masks for the shifted vertical taps.  Output row r receives
    # the dy=0 ("row above") tap only if it is not the first row of its image,
    # and the dy=2 ("row below") tap only if it is not the last row of its
    # image.  This implements both the conv's zero padding along H and the
    # image boundaries of the batch-flattened M axis — no halo scratch needed.
    h_id = lax.broadcasted_iota(jnp.int32, (M, 1), 0) % H
    take_above = h_id != 0
    take_below = h_id != (H - 1)

    def conv3x3(lhs, w_ref):
        # One full-M matmul per vertical tap (bf16 operands, f32 accumulation);
        # dy=0 / dy=2 results are shifted into place on the output side via an
        # XLU roll + VPU select instead of halo-padded / sliced LHS copies.
        rc = jnp.dot(lhs, w_ref[1], preferred_element_type=jnp.float32)
        r0 = jnp.dot(lhs, w_ref[0], preferred_element_type=jnp.float32)
        r2 = jnp.dot(lhs, w_ref[2], preferred_element_type=jnp.float32)
        above = jnp.where(take_above, pltpu.roll(r0, shift=1, axis=0), 0.0)
        below = jnp.where(take_below, pltpu.roll(r2, shift=M - 1, axis=0), 0.0)
        return rc + above + below
    # TODO(synk): on v6e/v7x the 3 taps could be fused along K (stacked bands +
    # im2col-over-H LHS) for one K=3*W*C matmul per conv, at the cost of a 3x
    # LHS slab in VMEM; not worth it at these sizes.

    # conv1 (bn1 scale folded into w1) + bias + ReLU; lane-dense bf16 store.
    o1_bf = jnp.maximum(conv3x3(x, w1_ref) + b1, 0.0).astype(out1_ref.dtype)
    out1_ref[...] = o1_bf.reshape(nb, H, WCmid)

    # conv2 on the SAME bf16 values returned as out1 (dropout = identity, eval).
    o2 = conv3x3(o1_bf, w2_ref) + b2

    # shortcut: 1x1 conv (bn_s scale folded into ws) + bias.
    sc = jnp.dot(x, ws_ref[...], preferred_element_type=jnp.float32) + bs

    out2_ref[...] = jnp.maximum(o2 + sc, 0.0).astype(out2_ref.dtype).reshape(nb, H, WCmid)


# --------------------------------------------------------------------------- #
# weight / BN preparation (done once, outside the kernel)
# --------------------------------------------------------------------------- #
def _banded_3x3(w_hwio, W):
    """(3, 3, Cin, Cout) HWIO -> (3, W*Cin, W*Cout) width-banded weights.
    band[dy][xi*Cin+ci, xo*Cout+co] = w[dy, dx, ci, co] with xi = xo + dx - 1
    (out-of-range xi omitted => implicit zero padding along W).
    TODO(synk): for Cin/Cout >= ~64 or large W, switch to per-tap K=C matmuls or
    W-windowed bands: the full band is O(W^2*C^2) memory and only ~3/W of its
    FLOPs are useful, which hurts v5e's smaller MXU and v7x's 64 MiB VMEM."""
    KH, KW, Cin, Cout = w_hwio.shape
    bands = []
    for dy in range(KH):
        b = jnp.zeros((W * Cin, W * Cout), w_hwio.dtype)
        for dx in range(KW):
            b = b + jnp.kron(jnp.eye(W, k=1 - dx, dtype=w_hwio.dtype), w_hwio[dy, dx])
        bands.append(b)
    return jnp.stack(bands)


def _fold_bn(bn):
    g, b, m, v = bn
    s = g / jnp.sqrt(v + EPS)
    return s, b - m * s


def prep_params(w1, w2, ws, bn1, bn2, bns, W):
    """OIHW conv weights + inference BN params -> MXU-ready bf16 banded weights
    (BN scale folded in, in f32, before the single bf16 cast) and a bias pack."""
    Cmid = w1.shape[0]
    s1, b1 = _fold_bn(bn1)
    s2, b2 = _fold_bn(bn2)
    ss, bs = _fold_bn(bns)

    w1_hwio = jnp.transpose(w1, (2, 3, 1, 0)) * s1            # scale along Cout
    w2_hwio = jnp.transpose(w2, (2, 3, 1, 0)) * s2
    ws_io = jnp.transpose(ws[:, :, 0, 0], (1, 0)) * ss        # (Cin, Cmid)

    w1_band = _banded_3x3(w1_hwio, W).astype(jnp.bfloat16)    # (3, W*Cin,  W*Cmid)
    w2_band = _banded_3x3(w2_hwio, W).astype(jnp.bfloat16)    # (3, W*Cmid, W*Cmid)
    ws_band = jnp.kron(jnp.eye(W, dtype=ws_io.dtype), ws_io).astype(jnp.bfloat16)

    WCmid = W * Cmid
    bias = jnp.zeros((8, WCmid), jnp.float32)                 # 3 rows used, sublane-padded
    bias = (bias.at[0].set(jnp.tile(b1, W))
                 .at[1].set(jnp.tile(b2, W))
                 .at[2].set(jnp.tile(bs, W)))
    return w1_band, w2_band, ws_band, bias


# --------------------------------------------------------------------------- #
# forward wrappers
# --------------------------------------------------------------------------- #
def res_basic_forward_nhwc(x_nhwc, prepped, nb=None):
    """Production entry point: channels-last activations in, channels-last out.
    x_nhwc: (N, H, W, Cin).  Returns (out1, out2) as (N, H, W, Cmid) bf16."""
    w1_band, w2_band, ws_band, bias = prepped
    N, H, W, Cin = x_nhwc.shape
    WCin = W * Cin
    WCmid = w1_band.shape[-1]
    Cmid = WCmid // W

    if nb is None:
        # Whole batch in one step (max matmul M, no per-step overhead) unless
        # two steps still give each v7x TensorCore a matmul with M >= 128.
        nb = N // 2 if (N % 2 == 0 and (N // 2) * H >= 128) else N
    assert N % nb == 0
    num_steps = N // nb
    # TODO(synk): for production (H,W,C) sizes, tile H (with the same roll+mask
    # halo trick at tile edges) and W-window the bands so blocks + weights stay
    # well under v7x's 64 MiB VMEM.

    # channels-fastest (N, H, W*C) slab: free reshape of NHWC, lane-dense stores.
    x = x_nhwc.astype(jnp.bfloat16).reshape(N, H, WCin)

    # Constant operands: single-buffer them when the grid actually iterates.
    const = {} if num_steps == 1 else dict(pipeline_mode=pl.Buffered(1))

    out1, out2 = pl.pallas_call(
        _res_basic_kernel,
        grid=(num_steps,),
        in_specs=[
            pl.BlockSpec((nb, H, WCin), lambda b: (b, 0, 0)),
            pl.BlockSpec(w1_band.shape, lambda b: (0, 0, 0), **const),
            pl.BlockSpec(w2_band.shape, lambda b: (0, 0, 0), **const),
            pl.BlockSpec(ws_band.shape, lambda b: (0, 0), **const),
            pl.BlockSpec(bias.shape, lambda b: (0, 0), **const),
        ],
        out_specs=(
            pl.BlockSpec((nb, H, WCmid), lambda b: (b, 0, 0)),
            pl.BlockSpec((nb, H, WCmid), lambda b: (b, 0, 0)),
        ),
        out_shape=(
            jax.ShapeDtypeStruct((N, H, WCmid), jnp.bfloat16),   # out1 (bf16 writeback)
            jax.ShapeDtypeStruct((N, H, WCmid), jnp.bfloat16),   # out2 (bf16 writeback)
        ),
        compiler_params=pltpu.CompilerParams(
            dimension_semantics=("parallel",),
            vmem_limit_bytes=32 * 1024 * 1024,
        ),
    )(x, w1_band, w2_band, ws_band, bias)

    return out1.reshape(N, H, W, Cmid), out2.reshape(N, H, W, Cmid)


def res_basic_forward_nchw(x_nchw, w1, w2, ws, bn1, bn2, bns):
    """Test-boundary adapter only: the PyTorch spec is NCHW, the kernel works
    channels-last.  In a real network keep activations NHWC end-to-end and call
    res_basic_forward_nhwc directly (no transposes, no extra HBM passes)."""
    N, Cin, H, W = x_nchw.shape
    prepped = prep_params(w1, w2, ws, bn1, bn2, bns, W)
    x_nhwc = jnp.transpose(x_nchw, (0, 2, 3, 1))
    o1, o2 = res_basic_forward_nhwc(x_nhwc, prepped)
    return (jnp.transpose(o1, (0, 3, 1, 2)),
            jnp.transpose(o2, (0, 3, 1, 2)))


# --------------------------------------------------------------------------- #
# deterministic parameter init + pure-JAX reference
# --------------------------------------------------------------------------- #
def init_params(key, in_planes, planes):
    ks = jax.random.split(key, 6)
    w1 = 0.1 * jax.random.normal(ks[0], (planes, in_planes, 3, 3), jnp.float32)   # OIHW
    w2 = 0.1 * jax.random.normal(ks[1], (planes, planes, 3, 3), jnp.float32)
    ws = 0.1 * jax.random.normal(ks[2], (planes, in_planes, 1, 1), jnp.float32)

    def bn_params(k):
        kg, kb, km, kv = jax.random.split(k, 4)
        gamma = 1.0 + 0.1 * jax.random.normal(kg, (planes,), jnp.float32)
        beta = 0.1 * jax.random.normal(kb, (planes,), jnp.float32)
        mean = 0.1 * jax.random.normal(km, (planes,), jnp.float32)
        var = jnp.abs(jax.random.normal(kv, (planes,), jnp.float32)) + 0.5
        return gamma, beta, mean, var

    return w1, w2, ws, bn_params(ks[3]), bn_params(ks[4]), bn_params(ks[5])


def ref_forward(x, w1, w2, ws, bn1, bn2, bns):
    dn = ('NCHW', 'OIHW', 'NCHW')

    def bn_apply(y, p):
        g, b, m, v = (t[None, :, None, None] for t in p)
        return (y - m) / jnp.sqrt(v + EPS) * g + b

    out = lax.conv_general_dilated(x, w1, (1, 1), ((1, 1), (1, 1)), dimension_numbers=dn)
    out1 = jnp.maximum(bn_apply(out, bn1), 0.0)
    out = lax.conv_general_dilated(out1, w2, (1, 1), ((1, 1), (1, 1)), dimension_numbers=dn)
    out = bn_apply(out, bn2)
    sc = lax.conv_general_dilated(x, ws, (1, 1), ((0, 0), (0, 0)), dimension_numbers=dn)
    out2 = jnp.maximum(out + bn_apply(sc, bns), 0.0)
    return out1, out2


if __name__ == "__main__":
    N, in_planes, planes, H, W = 2, 4, 8, 16, 16   # stride=1, in_planes != planes -> conv shortcut
    key = jax.random.PRNGKey(0)
    kx, kp = jax.random.split(key)

    x = jax.random.normal(kx, (N, in_planes, H, W), jnp.float32)
    w1, w2, ws, bn1, bn2, bns = init_params(kp, in_planes, planes)

    out1, out2 = res_basic_forward_nchw(x, w1, w2, ws, bn1, bn2, bns)
    jax.block_until_ready((out1, out2))

    r1, r2 = ref_forward(x, w1, w2, ws, bn1, bn2, bns)
    assert out1.shape == (N, planes, H, W) and out2.shape == (N, planes, H, W)
    # tolerances sized for bf16 MXU operands + bf16 outputs (f32 accumulation)
    assert jnp.allclose(out1.astype(jnp.float32), r1, atol=5e-2, rtol=5e-2), "out1 mismatch"
    assert jnp.allclose(out2.astype(jnp.float32), r2, atol=5e-2, rtol=5e-2), "out2 mismatch"

    print("KERNEL_OK")
</pallas_src>

<mosaic_0001>
module attributes {stable_mosaic.version = 11 : i64} {
  func.func @_res_basic_kernel(%arg0: i32, %arg1: memref<2x16x64xbf16, #tpu.memory_space<vmem>>, %arg2: memref<3x64x128xbf16, #tpu.memory_space<vmem>>, %arg3: memref<3x128x128xbf16, #tpu.memory_space<vmem>>, %arg4: memref<64x128xbf16, #tpu.memory_space<vmem>>, %arg5: memref<8x128xf32, #tpu.memory_space<vmem>>, %arg6: memref<2x16x128xbf16, #tpu.memory_space<vmem>>, %arg7: memref<2x16x128xbf16, #tpu.memory_space<vmem>>) attributes {dimension_semantics = [#tpu.dimension_semantics<parallel>], iteration_bounds = array<i64: 1>, scalar_prefetch = 0 : i64, scratch_operands = 0 : i64, tpu.core_type = #tpu.core_type<tc>, window_params = [{transform_indices = @transform_0, window_bounds = array<i64: 2, 16, 64>}, {pipeline_mode = #tpu.pipeline_mode<synchronous>, transform_indices = @transform_1, window_bounds = array<i64: 3, 64, 128>}, {pipeline_mode = #tpu.pipeline_mode<synchronous>, transform_indices = @transform_2, window_bounds = array<i64: 3, 128, 128>}, {pipeline_mode = #tpu.pipeline_mode<synchronous>, transform_indices = @transform_3, window_bounds = array<i64: 64, 128>}, {pipeline_mode = #tpu.pipeline_mode<synchronous>, transform_indices = @transform_4, window_bounds = array<i64: 8, 128>}, {transform_indices = @transform_5, window_bounds = array<i64: 2, 16, 128>}, {transform_indices = @transform_6, window_bounds = array<i64: 2, 16, 128>}]} {
    %c0 = arith.constant 0 : index
    %c0_0 = arith.constant 0 : index
    %c0_1 = arith.constant 0 : index
    %0 = vector.load %arg1[%c0, %c0_0, %c0_1] : memref<2x16x64xbf16, #tpu.memory_space<vmem>>, vector<2x16x64xbf16>
    %1 = vector.shape_cast %0 : vector<2x16x64xbf16> to vector<32x64xbf16>
    %c0_2 = arith.constant 0 : index
    %c0_3 = arith.constant 0 : index
    %2 = vector.load %arg5[%c0_2, %c0_3] : memref<8x128xf32, #tpu.memory_space<vmem>>, vector<1x128xf32>
    %c1 = arith.constant 1 : index
    %c0_4 = arith.constant 0 : index
    %3 = vector.load %arg5[%c1, %c0_4] : memref<8x128xf32, #tpu.memory_space<vmem>>, vector<1x128xf32>
    %c2 = arith.constant 2 : index
    %c0_5 = arith.constant 0 : index
    %4 = vector.load %arg5[%c2, %c0_5] : memref<8x128xf32, #tpu.memory_space<vmem>>, vector<1x128xf32>
    %5 = tpu.iota {dimensions = array<i32: 0>} : vector<32x1xi32>
    %c16_i32 = arith.constant 16 : i32
    %c0_i32 = arith.constant 0 : i32
    %6 = arith.cmpi eq, %c16_i32, %c0_i32 : i32
    %c1_i32 = arith.constant 1 : i32
    %7 = arith.select %6, %c1_i32, %c16_i32 : i32
    %8 = vector.broadcast %7 : i32 to vector<32x1xi32>
    %9 = arith.remsi %5, %8 : vector<32x1xi32>
    %c0_i32_6 = arith.constant 0 : i32
    %10 = vector.broadcast %c0_i32_6 : i32 to vector<32x1xi32>
    %11 = arith.cmpi ne, %9, %10 : vector<32x1xi32>
    %c0_i32_7 = arith.constant 0 : i32
    %12 = vector.broadcast %c0_i32_7 : i32 to vector<32x1xi32>
    %13 = arith.cmpi slt, %9, %12 : vector<32x1xi32>
    %c0_i32_8 = arith.constant 0 : i32
    %14 = arith.cmpi slt, %7, %c0_i32_8 : i32
    %15 = vector.broadcast %14 : i1 to vector<32x1xi1>
    %16 = vector.broadcast %15 : vector<32x1xi1> to vector<32x1xi1>
    %17 = arith.xori %13, %16 : vector<32x1xi1>
    %18 = arith.andi %17, %11 : vector<32x1xi1>
    %19 = vector.broadcast %7 : i32 to vector<32x1xi32>
    %20 = arith.addi %9, %19 : vector<32x1xi32>
    %21 = arith.select %18, %20, %9 : vector<32x1xi1>, vector<32x1xi32>
    %c0_i32_9 = arith.constant 0 : i32
    %22 = vector.broadcast %c0_i32_9 : i32 to vector<32x1xi32>
    %23 = arith.cmpi ne, %21, %22 : vector<32x1xi32>
    %c15_i32 = arith.constant 15 : i32
    %24 = vector.broadcast %c15_i32 : i32 to vector<32x1xi32>
    %25 = arith.cmpi ne, %21, %24 : vector<32x1xi32>
    %c1_10 = arith.constant 1 : index
    %c0_11 = arith.constant 0 : index
    %c0_12 = arith.constant 0 : index
    %26 = vector.load %arg2[%c1_10, %c0_11, %c0_12] : memref<3x64x128xbf16, #tpu.memory_space<vmem>>, vector<1x64x128xbf16>
    %27 = vector.shape_cast %26 : vector<1x64x128xbf16> to vector<64x128xbf16>
    %cst = arith.constant dense<0.000000e+00> : vector<32x128xf32>
    %28 = tpu.matmul %1, %27, %cst {dimension_numbers = #tpu.dot_dimension_numbers<[1], [0], [0], [1], [0, 0, 1, 1], [], []>} : vector<32x64xbf16>, vector<64x128xbf16>, vector<32x128xf32> -> vector<32x128xf32>
    %c0_13 = arith.constant 0 : index
    %c0_14 = arith.constant 0 : index
    %c0_15 = arith.constant 0 : index
    %29 = vector.load %arg2[%c0_13, %c0_14, %c0_15] : memref<3x64x128xbf16, #tpu.memory_space<vmem>>, vector<1x64x128xbf16>
    %30 = vector.shape_cast %29 : vector<1x64x128xbf16> to vector<64x128xbf16>
    %cst_16 = arith.constant dense<0.000000e+00> : vector<32x128xf32>
    %31 = tpu.matmul %1, %30, %cst_16 {dimension_numbers = #tpu.dot_dimension_numbers<[1], [0], [0], [1], [0, 0, 1, 1], [], []>} : vector<32x64xbf16>, vector<64x128xbf16>, vector<32x128xf32> -> vector<32x128xf32>
    %c2_17 = arith.constant 2 : index
    %c0_18 = arith.constant 0 : index
    %c0_19 = arith.constant 0 : index
    %32 = vector.load %arg2[%c2_17, %c0_18, %c0_19] : memref<3x64x128xbf16, #tpu.memory_space<vmem>>, vector<1x64x128xbf16>
    %33 = vector.shape_cast %32 : vector<1x64x128xbf16> to vector<64x128xbf16>
    %cst_20 = arith.constant dense<0.000000e+00> : vector<32x128xf32>
    %34 = tpu.matmul %1, %33, %cst_20 {dimension_numbers = #tpu.dot_dimension_numbers<[1], [0], [0], [1], [0, 0, 1, 1], [], []>} : vector<32x64xbf16>, vector<64x128xbf16>, vector<32x128xf32> -> vector<32x128xf32>
    %c1_i32_21 = arith.constant 1 : i32
    %35 = tpu.dynamic_rotate %31 by %c1_i32_21 dim 0 : vector<32x128xf32>, i32 -> vector<32x128xf32>
    %cst_22 = arith.constant 0.000000e+00 : f32
    %36 = vector.shape_cast %23 : vector<32x1xi1> to vector<32x1xi1>
    %37 = vector.broadcast %36 : vector<32x1xi1> to vector<32x128xi1>
    %38 = vector.broadcast %cst_22 : f32 to vector<32x128xf32>
    %39 = arith.select %37, %35, %38 : vector<32x128xi1>, vector<32x128xf32>
    %c31_i32 = arith.constant 31 : i32
    %40 = tpu.dynamic_rotate %34 by %c31_i32 dim 0 : vector<32x128xf32>, i32 -> vector<32x128xf32>
    %cst_23 = arith.constant 0.000000e+00 : f32
    %41 = vector.shape_cast %25 : vector<32x1xi1> to vector<32x1xi1>
    %42 = vector.broadcast %41 : vector<32x1xi1> to vector<32x128xi1>
    %43 = vector.broadcast %cst_23 : f32 to vector<32x128xf32>
    %44 = arith.select %42, %40, %43 : vector<32x128xi1>, vector<32x128xf32>
    %45 = arith.addf %28, %39 : vector<32x128xf32>
    %46 = arith.addf %45, %44 : vector<32x128xf32>
    %47 = vector.broadcast %2 : vector<1x128xf32> to vector<32x128xf32>
    %48 = arith.addf %46, %47 : vector<32x128xf32>
    %cst_24 = arith.constant 0.000000e+00 : f32
    %49 = vector.broadcast %cst_24 : f32 to vector<32x128xf32>
    %50 = arith.maximumf %48, %49 : vector<32x128xf32>
    %51 = arith.truncf %50 : vector<32x128xf32> to vector<32x128xbf16>
    %52 = vector.shape_cast %51 : vector<32x128xbf16> to vector<2x16x128xbf16>
    %c0_25 = arith.constant 0 : index
    %c0_26 = arith.constant 0 : index
    %c0_27 = arith.constant 0 : index
    %53 = vector.load %arg6[%c0_25, %c0_26, %c0_27] : memref<2x16x128xbf16, #tpu.memory_space<vmem>>, vector<2x16x128xbf16>
    tpu.vector_store %arg6[%c0_25, %c0_26, %c0_27], %52 {strides = array<i32>} : memref<2x16x128xbf16, #tpu.memory_space<vmem>>, vector<2x16x128xbf16>,
    %c1_28 = arith.constant 1 : index
    %c0_29 = arith.constant 0 : index
    %c0_30 = arith.constant 0 : index
    %54 = vector.load %arg3[%c1_28, %c0_29, %c0_30] : memref<3x128x128xbf16, #tpu.memory_space<vmem>>, vector<1x128x128xbf16>
    %55 = vector.shape_cast %54 : vector<1x128x128xbf16> to vector<128x128xbf16>
    %cst_31 = arith.constant dense<0.000000e+00> : vector<32x128xf32>
    %56 = tpu.matmul %51, %55, %cst_31 {dimension_numbers = #tpu.dot_dimension_numbers<[1], [0], [0], [1], [0, 0, 1, 1], [], []>} : vector<32x128xbf16>, vector<128x128xbf16>, vector<32x128xf32> -> vector<32x128xf32>
    %c0_32 = arith.constant 0 : index
    %c0_33 = arith.constant 0 : index
    %c0_34 = arith.constant 0 : index
    %57 = vector.load %arg3[%c0_32, %c0_33, %c0_34] : memref<3x128x128xbf16, #tpu.memory_space<vmem>>, vector<1x128x128xbf16>
    %58 = vector.shape_cast %57 : vector<1x128x128xbf16> to vector<128x128xbf16>
    %cst_35 = arith.constant dense<0.000000e+00> : vector<32x128xf32>
    %59 = tpu.matmul %51, %58, %cst_35 {dimension_numbers = #tpu.dot_dimension_numbers<[1], [0], [0], [1], [0, 0, 1, 1], [], []>} : vector<32x128xbf16>, vector<128x128xbf16>, vector<32x128xf32> -> vector<32x128xf32>
    %c2_36 = arith.constant 2 : index
    %c0_37 = arith.constant 0 : index
    %c0_38 = arith.constant 0 : index
    %60 = vector.load %arg3[%c2_36, %c0_37, %c0_38] : memref<3x128x128xbf16, #tpu.memory_space<vmem>>, vector<1x128x128xbf16>
    %61 = vector.shape_cast %60 : vector<1x128x128xbf16> to vector<128x128xbf16>
    %cst_39 = arith.constant dense<0.000000e+00> : vector<32x128xf32>
    %62 = tpu.matmul %51, %61, %cst_39 {dimension_numbers = #tpu.dot_dimension_numbers<[1], [0], [0], [1], [0, 0, 1, 1], [], []>} : vector<32x128xbf16>, vector<128x128xbf16>, vector<32x128xf32> -> vector<32x128xf32>
    %c1_i32_40 = arith.constant 1 : i32
    %63 = tpu.dynamic_rotate %59 by %c1_i32_40 dim 0 : vector<32x128xf32>, i32 -> vector<32x128xf32>
    %cst_41 = arith.constant 0.000000e+00 : f32
    %64 = vector.shape_cast %23 : vector<32x1xi1> to vector<32x1xi1>
    %65 = vector.broadcast %64 : vector<32x1xi1> to vector<32x128xi1>
    %66 = vector.broadcast %cst_41 : f32 to vector<32x128xf32>
    %67 = arith.select %65, %63, %66 : vector<32x128xi1>, vector<32x128xf32>
    %c31_i32_42 = arith.constant 31 : i32
    %68 = tpu.dynamic_rotate %62 by %c31_i32_42 dim 0 : vector<32x128xf32>, i32 -> vector<32x128xf32>
    %cst_43 = arith.constant 0.000000e+00 : f32
    %69 = vector.shape_cast %25 : vector<32x1xi1> to vector<32x1xi1>
    %70 = vector.broadcast %69 : vector<32x1xi1> to vector<32x128xi1>
    %71 = vector.broadcast %cst_43 : f32 to vector<32x128xf32>
    %72 = arith.select %70, %68, %71 : vector<32x128xi1>, vector<32x128xf32>
    %73 = arith.addf %56, %67 : vector<32x128xf32>
    %74 = arith.addf %73, %72 : vector<32x128xf32>
    %75 = vector.broadcast %3 : vector<1x128xf32> to vector<32x128xf32>
    %76 = arith.addf %74, %75 : vector<32x128xf32>
    %c0_44 = arith.constant 0 : index
    %c0_45 = arith.constant 0 : index
    %77 = vector.load %arg4[%c0_44, %c0_45] : memref<64x128xbf16, #tpu.memory_space<vmem>>, vector<64x128xbf16>
    %cst_46 = arith.constant dense<0.000000e+00> : vector<32x128xf32>
    %78 = tpu.matmul %1, %77, %cst_46 {dimension_numbers = #tpu.dot_dimension_numbers<[1], [0], [0], [1], [0, 0, 1, 1], [], []>} : vector<32x64xbf16>, vector<64x128xbf16>, vector<32x128xf32> -> vector<32x128xf32>
    %79 = vector.broadcast %4 : vector<1x128xf32> to vector<32x128xf32>
    %80 = arith.addf %78, %79 : vector<32x128xf32>
    %81 = arith.addf %76, %80 : vector<32x128xf32>
    %cst_47 = arith.constant 0.000000e+00 : f32
    %82 = vector.broadcast %cst_47 : f32 to vector<32x128xf32>
    %83 = arith.maximumf %81, %82 : vector<32x128xf32>
    %84 = arith.truncf %83 : vector<32x128xf32> to vector<32x128xbf16>
    %85 = vector.shape_cast %84 : vector<32x128xbf16> to vector<2x16x128xbf16>
    %c0_48 = arith.constant 0 : index
    %c0_49 = arith.constant 0 : index
    %c0_50 = arith.constant 0 : index
    %86 = vector.load %arg7[%c0_48, %c0_49, %c0_50] : memref<2x16x128xbf16, #tpu.memory_space<vmem>>, vector<2x16x128xbf16>
    tpu.vector_store %arg7[%c0_48, %c0_49, %c0_50], %85 {strides = array<i32>} : memref<2x16x128xbf16, #tpu.memory_space<vmem>>, vector<2x16x128xbf16>,
    return
  }
  func.func @transform_0(%arg0: i32) -> (i32, i32, i32) {
    %c0_i32 = arith.constant 0 : i32
    %c0_i32_0 = arith.constant 0 : i32
    %c0_i32_1 = arith.constant 0 : i32
    return %arg0, %c0_i32, %c0_i32_0 : i32, i32, i32
  }
  func.func @transform_1(%arg0: i32) -> (i32, i32, i32) {
    %c0_i32 = arith.constant 0 : i32
    %c0_i32_0 = arith.constant 0 : i32
    %c0_i32_1 = arith.constant 0 : i32
    %c0_i32_2 = arith.constant 0 : i32
    return %c0_i32, %c0_i32_0, %c0_i32_1 : i32, i32, i32
  }
  func.func @transform_2(%arg0: i32) -> (i32, i32, i32) {
    %c0_i32 = arith.constant 0 : i32
    %c0_i32_0 = arith.constant 0 : i32
    %c0_i32_1 = arith.constant 0 : i32
    %c0_i32_2 = arith.constant 0 : i32
    return %c0_i32, %c0_i32_0, %c0_i32_1 : i32, i32, i32
  }
  func.func @transform_3(%arg0: i32) -> (i32, i32) {
    %c0_i32 = arith.constant 0 : i32
    %c0_i32_0 = arith.constant 0 : i32
    %c0_i32_1 = arith.constant 0 : i32
    return %c0_i32, %c0_i32_0 : i32, i32
  }
  func.func @transform_4(%arg0: i32) -> (i32, i32) {
    %c0_i32 = arith.constant 0 : i32
    %c0_i32_0 = arith.constant 0 : i32
    %c0_i32_1 = arith.constant 0 : i32
    return %c0_i32, %c0_i32_0 : i32, i32
  }
  func.func @transform_5(%arg0: i32) -> (i32, i32, i32) {
    %c0_i32 = arith.constant 0 : i32
    %c0_i32_0 = arith.constant 0 : i32
    %c0_i32_1 = arith.constant 0 : i32
    return %arg0, %c0_i32, %c0_i32_0 : i32, i32, i32
  }
  func.func @transform_6(%arg0: i32) -> (i32, i32, i32) {
    %c0_i32 = arith.constant 0 : i32
    %c0_i32_0 = arith.constant 0 : i32
    %c0_i32_1 = arith.constant 0 : i32
    return %arg0, %c0_i32, %c0_i32_0 : i32, i32, i32
  }
}

</mosaic_0001>

<bundles_post_ra>
// kernel: tpu_custom_call.1
= control target key start
LH: loop header
LB: loop body
LE: loop exit
PB: predicated region body
PF: predicated region fallthrough
CT: control target
= control target key end

     0   :  { %12 = vsyncpa [#allocation3], 0  ;;  %s1418_s0 = inlined_call_operand.hbm [shape: bf16[2,16,64], index: 0, kind: input, shape index: {}]   ;;  %s1419_s1 = inlined_call_operand.hbm [shape: bf16[3,64,128], index: 1, kind: input, shape index: {}]   ;;  %s1420_s2 = inlined_call_operand.hbm [shape: bf16[3,128,128], index: 2, kind: input, shape index: {}]   ;;  %s1421_s3 = inlined_call_operand.hbm [shape: bf16[64,128], index: 3, kind: input, shape index: {}]   ;;  %s1422_s4 = inlined_call_operand.hbm [shape: f32[8,128], index: 4, kind: input, shape index: {}]   ;;  %s1423_s5 = inlined_call_operand.hbm [shape: bf16[2,16,128], index: 5, kind: output, shape index: {0}]   ;;  %s1424_s6 = inlined_call_operand.hbm [shape: bf16[2,16,128], index: 6, kind: output, shape index: {1}]  }
   0x1   :  { %13 = vsyncpa [#allocation6], 0 }
   0x2   :  { %14 = vsyncpa [#allocation9], 0 }
   0x3   :  { %15 = vsyncpa [#allocation4], 0 }
   0x4   :  { %16 = vsyncpa [#allocation13], 0  ;;  %s34_s23 = sshll.u32 %s1419_s1, 4  ;;  %s1237_s24 = smov [#allocation5]   ;;  %s35_s23 = int_to_ptr.hbm [resolvable:$true] %s34_s23 }
   0x5   :  { %s36_s25 = sshll.u32 %s1237_s24, 4  ;;  %s60_s28 = sshll.u32 %s1421_s3, 4  ;;  %s37_s25 = int_to_ptr.vmem [resolvable:$true] %s36_s25  ;;  %s61_s28 = int_to_ptr.hbm [resolvable:$true] %s60_s28 }
   0x6   :  { %s1238_s29 = smov 64   ;;  %s1239_s30 = smov 4  }
   0x7   :  { %42 = dma.hbm_to_vmem [thread:$0]  %s35_s23, 1536, %s37_s25, [#allocation6], %s1238_s29, %s1238_s29, %s1239_s30  }
   0x8   :  { %s1240_s7 = smov [#allocation8]   ;;  %s21_s1 = sshll.u32 %s1418_s0, 4  ;;  %s22_s1 = int_to_ptr.hbm [resolvable:$true] %s21_s1 }
   0x9   :  { %s62_s8 = sshll.u32 %s1240_s7, 4  ;;  %s47_s12 = sshll.u32 %s1420_s2, 4  ;;  %s63_s8 = int_to_ptr.vmem [resolvable:$true] %s62_s8  ;;  %s48_s12 = int_to_ptr.hbm [resolvable:$true] %s47_s12 }
   0xa   :  { %68 = dma.hbm_to_vmem [thread:$0]  %s61_s28, 512, %s63_s8, [#allocation9], %s1238_s29, %s1238_s29, %s1239_s30  }
   0xb   :  { %s1241_s13 = smov [#allocation2]   ;;  %s1242_s15 = smov [#allocation7]  }
   0xc   :  { %s23_s14 = sshll.u32 %s1241_s13, 4  ;;  %s49_s0 = sshll.u32 %s1242_s15, 4  ;;  %s24_s14 = int_to_ptr.vmem [resolvable:$true] %s23_s14  ;;  %s50_s0 = int_to_ptr.vmem [resolvable:$true] %s49_s0 }
   0xd   :  { %29 = dma.hbm_to_vmem [thread:$0]  %s22_s1, 256, %s24_s14, [#allocation3], %s1238_s29, %s1238_s29, %s1239_s30  }
   0xe   :  { %s74_s18 = sshll.u32 %s1422_s4, 4  ;;  %s1243_s2 = smov [#allocation10]   ;;  %s75_s18 = int_to_ptr.hbm [resolvable:$true] %s74_s18 }
   0xf   :  { %55 = dma.hbm_to_vmem [thread:$0]  %s48_s12, 3072, %s50_s0, [#allocation6], %s1238_s29, %s1238_s29, %s1239_s30  }
  0x10   :  { %s76_s19 = sshll.u32 %s1243_s2, 4  ;;  %s77_s19 = int_to_ptr.vmem [resolvable:$true] %s76_s19 }
  0x11   :  { %79 = dma.hbm_to_vmem [thread:$0]  %s75_s18, 128, %s77_s19, [#allocation9]  }
  0x12   :  { %1227 = dma.done.wait [#allocation3], 256  }
  0x13   :  { %1228 = vsyncadd [#allocation3], 4294967040 }
  0x14   :  { %1229 = dma.done.wait [#allocation6], 4608  }
  0x15   :  { %1230 = vsyncadd [#allocation6], 4294962688 }
  0x16   :  { %1231 = dma.done.wait [#allocation9], 640  }
  0x17   :  { %1232 = vsyncadd [#allocation9], 4294966656  ;;  %v992_v0 = vld [vmem:[#allocation5 + $0x18] sm:$0xff]  ;;  %v991_v3 = vld [vmem:[#allocation5 + $0x10] sm:$0xff]  ;;  %vm220_vm0 = vcmask 523264   ;;  %v108_v36 = vlaneseq  ;;  %s774_s21 = sshll.u32 %s1423_s5, 4  ;;  %s775_s21 = int_to_ptr.hbm [resolvable:$true] %s774_s21 }
  0x18   :  { %v996_v1 = vld [vmem:[#allocation5 + $0x58] sm:$0xff]  ;;  %231 = vmatpush.bf16.msra.mxu0 %v992_v0  ;;  %v995_v4 = vld [vmem:[#allocation5 + $0x50] sm:$0xff]  ;;  %v990_v6 = vld [vmem:[#allocation5 + $0x8] sm:$0xff]  ;;  %s1244_s22 = smov [#allocation11]   ;;  %s1245_s5 = smov [#allocation12]  }
  0x19   :  { %v988_v2 = vld [vmem:[#allocation5 + $0x38] sm:$0xff]  ;;  %283 = vmatpush.bf16.msra.mxu1 %v996_v1  ;;  %v987_v5 = vld [vmem:[#allocation5 + $0x30] sm:$0xff]  ;;  %v994_v7 = vld [vmem:[#allocation5 + $0x48] sm:$0xff]  ;;  %v1328_v42 = vshrl.u32 %v108_v36, 7  ;;  %s772_s23 = sshll.u32 %s1244_s22, 4  ;;  %s785_s24 = sshll.u32 %s1245_s5, 4  ;;  %s773_s23 = int_to_ptr.vmem [resolvable:$true] %s772_s23  ;;  %s786_s24 = int_to_ptr.vmem [resolvable:$true] %s785_s24 }
  0x1a   :  { %368 = vmatpush.bf16.msra.mxu2 %v988_v2  ;;  %v986_v8 = vld [vmem:[#allocation5 + $0x28] sm:$0xff]  ;;  %v989_v9 = vld [vmem:[#allocation5] sm:$0xff]  ;;  %v1308_v12 = vld [vmem:[#allocation2] sm:$0xff]  ;;  %s787_s27 = sshll.u32 %s1424_s6, 4  ;;  %s788_s27 = int_to_ptr.hbm [resolvable:$true] %s787_s27 }
  0x1b   :  { %v993_v10 = vld [vmem:[#allocation5 + $0x40] sm:$0xff]  ;;  %v1316_v13 = vld [vmem:[#allocation2 + $0x8] sm:$0xff]  ;;  %v1011_v17 = vld [vmem:[#allocation7 + $0x30] sm:$0xff]  ;;  %v110_v49 = vadd.s32 8, %v1328_v42  ;;  %v111_v55 = vadd.s32 16, %v1328_v42  ;;  %vm302_vm1 = vcmp.lt.s32.totalorder %v1328_v42, 1 }
  0x1c   :  { %232 = vmatpush.bf16.msra.mxu0 %v991_v3  ;;  %v985_v11 = vld [vmem:[#allocation5 + $0x20] sm:$0xff]  ;;  %v1012_v14 = vld [vmem:[#allocation7 + $0x38] sm:$0xff]  ;;  %v1019_v18 = vld [vmem:[#allocation7 + $0xb0] sm:$0xff]  ;;  %vm323_vm3 = vcmp.lt.s32.totalorder %v1328_v42, 7  ;;  %v117_v2 = vand.u32 15, %v1328_v42  ;;  %v112_v3 = vadd.s32 24, %v1328_v42 }
  0x1d   :  { %284 = vmatpush.bf16.msra.mxu1 %v995_v4  ;;  %v1020_v15 = vld [vmem:[#allocation7 + $0xb8] sm:$0xff]  ;;  %497 = vmatpush.bf16.msra.mxu3 %v1012_v14  ;;  %v1003_v19 = vld [vmem:[#allocation7 + $0x70] sm:$0xff]  ;;  %v1010_v20 = vld [vmem:[#allocation7 + $0x28] sm:$0xff]  ;;  %v124_v50 = vand.u32 15, %v110_v49  ;;  %v131_v0 = vand.u32 15, %v111_v55 }
  0x1e   :  { %369 = vmatpush.bf16.msra.mxu2 %v987_v5  ;;  %v1004_v16 = vld [vmem:[#allocation7 + $0x78] sm:$0xff]  ;;  %v1018_v21 = vld [vmem:[#allocation7 + $0xa8] sm:$0xff]  ;;  %v1009_v24 = vld [vmem:[#allocation7 + $0x20] sm:$0xff]  ;;  %vm1355_vm5 = vcmp.ne.s32.totalorder %v117_v2, 0 }
  0x1f   :  { %v1002_v22 = vld [vmem:[#allocation7 + $0x68] sm:$0xff]  ;;  %v1024_v23 = vld [vmem:[#allocation8 + $0x18] sm:$0xff]  ;;  %v1017_v25 = vld [vmem:[#allocation7 + $0xa0] sm:$0xff]  ;;  %vm1335_vm2 = vcmp.ne.s32.totalorder %v124_v50, 15  ;;  %vm1349_vm4 = vcmp.ne.s32.totalorder %v131_v0, 0 }
  0x20   :  { %233 = vmatpush.bf16.msra.mxu0 %v990_v6  ;;  %v1001_v26 = vld [vmem:[#allocation7 + $0x60] sm:$0xff]  ;;  %v1008_v27 = vld [vmem:[#allocation7 + $0x18] sm:$0xff]  ;;  %v1023_v30 = vld [vmem:[#allocation8 + $0x10] sm:$0xff] }
  0x21   :  { %285 = vmatpush.bf16.msra.mxu1 %v994_v7  ;;  %498 = vmatpush.bf16.msra.mxu3 %v1011_v17  ;;  %v1016_v28 = vld [vmem:[#allocation7 + $0x98] sm:$0xff]  ;;  %v1007_v31 = vld [vmem:[#allocation7 + $0x10] sm:$0xff]  ;;  %v1022_v37 = vld [vmem:[#allocation8 + $0x8] sm:$0xff] }
  0x22   :  { %370 = vmatpush.bf16.msra.mxu2 %v986_v8  ;;  %v1000_v29 = vld [vmem:[#allocation7 + $0x58] sm:$0xff]  ;;  %v1015_v32 = vld [vmem:[#allocation7 + $0x90] sm:$0xff]  ;;  %v1006_v38 = vld [vmem:[#allocation7 + $0x8] sm:$0xff] }
  0x23   :  { %v999_v35 = vld [vmem:[#allocation7 + $0x50] sm:$0xff]  ;;  %v1014_v39 = vld [vmem:[#allocation7 + $0x88] sm:$0xff]  ;;  %v1005_v43 = vld [vmem:[#allocation7] sm:$0xff] }
  0x24   :  { %234 = vmatpush.bf16.msra.mxu0 %v989_v9  ;;  %v998_v40 = vld [vmem:[#allocation7 + $0x48] sm:$0xff]  ;;  %v1013_v44 = vld [vmem:[#allocation7 + $0x80] sm:$0xff] }
  0x25   :  { %286 = vmatpush.bf16.msra.mxu1 %v993_v10  ;;  %499 = vmatpush.bf16.msra.mxu3 %v1010_v20  ;;  %v997_v45 = vld [vmem:[#allocation7 + $0x40] sm:$0xff] }
  0x26   :  { %371 = vmatpush.bf16.msra.mxu2 %v985_v11  ;;  %v1021_v48 = vld [vmem:[#allocation8] sm:$0xff] }
  0x27   :  { %831 = vmatmul.msk.bf16.vlgmr.msra.gmra.mxu0 %vm220_vm0, %v1308_v12  ;;  %v1056_v6 = vld [vmem:[#allocation10] ss:$0 sm:$0xff] }
  0x28   :  { %849 = vmatmul.msk.bf16.vlgmr.msra.gmra.mxu1 %vm220_vm0, %v1308_v12  ;;  %581 = vmatpush.bf16.msrb.mxu0 %v1020_v15 }
  0x29   :  { %867 = vmatmul.msk.bf16.vlgmr.msra.gmra.mxu2 %vm220_vm0, %v1308_v12  ;;  %672 = vmatpush.bf16.msrb.mxu1 %v1004_v16  ;;  %v138_v16 = vand.u32 15, %v112_v3 }
  0x2a   :  { %737 = vmatpush.bf16.msrb.mxu2 %v1024_v23  ;;  %500 = vmatpush.bf16.msra.mxu3 %v1009_v24 }
  0x2b   :  { %vm1370_vm6 = vcmp.ne.s32.totalorder %v138_v16, 15 }
  0x2c   :  { %582 = vmatpush.bf16.msrb.mxu0 %v1019_v18 }
  0x2d   :  { %673 = vmatpush.bf16.msrb.mxu1 %v1003_v19 }
  0x2e   :  { %501 = vmatpush.bf16.msra.mxu3 %v1008_v27  ;;  %738 = vmatpush.bf16.msrb.mxu2 %v1023_v30 }
  0x30   :  { %583 = vmatpush.bf16.msrb.mxu0 %v1018_v21 }
  0x31   :  { %674 = vmatpush.bf16.msrb.mxu1 %v1002_v22 }
  0x32   :  { %502 = vmatpush.bf16.msra.mxu3 %v1007_v31  ;;  %739 = vmatpush.bf16.msrb.mxu2 %v1022_v37 }
  0x34   :  { %584 = vmatpush.bf16.msrb.mxu0 %v1017_v25 }
  0x35   :  { %675 = vmatpush.bf16.msrb.mxu1 %v1001_v26 }
  0x36   :  { %503 = vmatpush.bf16.msra.mxu3 %v1006_v38  ;;  %740 = vmatpush.bf16.msrb.mxu2 %v1021_v48 }
  0x37   :  { %832 = vmatmul.msk.bf16.gmra.mxu0 %vm220_vm0, %v1316_v13 }
  0x38   :  { %850 = vmatmul.msk.bf16.gmra.mxu1 %vm220_vm0, %v1316_v13  ;;  %585 = vmatpush.bf16.msrb.mxu0 %v1016_v28 }
  0x39   :  { %868 = vmatmul.msk.bf16.gmra.mxu2 %vm220_vm0, %v1316_v13  ;;  %676 = vmatpush.bf16.msrb.mxu1 %v1000_v29 }
  0x3a   :  { %504 = vmatpush.bf16.msra.mxu3 %v1005_v43 }
  0x3c   :  { %586 = vmatpush.bf16.msrb.mxu0 %v1015_v32 }
  0x3d   :  { %677 = vmatpush.bf16.msrb.mxu1 %v999_v35 }
  0x40   :  { %587 = vmatpush.bf16.msrb.mxu0 %v1014_v39 }
  0x41   :  { %678 = vmatpush.bf16.msrb.mxu1 %v998_v40 }
  0x44   :  { %588 = vmatpush.bf16.msrb.mxu0 %v1013_v44 }
  0x45   :  { %679 = vmatpush.bf16.msrb.mxu1 %v997_v45 }
  0x49   :  { %981 = vmatmul.msk.bf16.vlgmr.msrb.gmra.mxu2 %vm220_vm0, %v1308_v12 }
  0x59   :  { %982 = vmatmul.msk.bf16.gmra.mxu2 %vm220_vm0, %v1316_v13 }
  0xa4   :  { %v1324_v33 = vpop.f32.mrf.mxu0 }
  0xa5   :  { %v1326_v34 = vpop.f32.mrf.mxu1  ;;  %v298_v59 = vrot.slane %v1324_v33, 7 }
  0xa6   :  { %v319_v15 = vrot.slane %v1326_v34, 1 }
  0xac   :  { %v373_v41 = vpop.f32.mrf.mxu2  ;;  %v238_v46 = vpop.f32.mrf.mxu0 }
  0xad   :  { %v290_v47 = vpop.f32.mrf.mxu1  ;;  %v299_v52 = vrot.slane %v238_v46, 7 }
  0xae   :  { %v320_v56 = vrot.slane %v290_v47, 1 }
  0xaf   :  { %v305_v61 = vsel %vm302_vm1, %v298_v59, %v299_v52 }
  0xb0   :  { %v326_v24 = vsel %vm323_vm3, %v319_v15, %v320_v56 }
  0xb4   :  { %v375_v51 = vpop.f32.mrf.mxu2  ;;  %v241_v53 = vpop.f32.mrf.mxu0 }
  0xb5   :  { %v293_v54 = vpop.f32.mrf.mxu1  ;;  %v300_v62 = vrot.slane %v241_v53, 7  ;;  %v376_v1 = vadd.f32 %v375_v51, %v305_v61 }
  0xb6   :  { %v321_v58 = vrot.slane %v293_v54, 1 }
  0xb7   :  { %v304_v8 = vsel %vm302_vm1, %v299_v52, %v300_v62 }
  0xb8   :  { %v325_v60 = vsel %vm323_vm3, %v320_v56, %v321_v58  ;;  %v317_v17 = vsel %vm1349_vm4, %v304_v8, 0.0 }
  0xb9   :  { %v337_v63 = vsel %vm1335_vm2, %v325_v60, 0.0 }
  0xba   :  { %v384_v4 = vadd.f32 %v376_v1, %v337_v63 }
  0xbc   :  { %v378_v5 = vpop.f32.mrf.mxu2  ;;  %v243_v9 = vpop.f32.mrf.mxu0  ;;  %v389_v20 = vadd.f32 %v1056_v6, %v384_v4 }
  0xbd   :  { %v295_v10 = vpop.f32.mrf.mxu1  ;;  %v301_v12 = vrot.slane %v243_v9, 7  ;;  %v379_v21 = vadd.f32 %v378_v5, %v317_v17 }
  0xbe   :  { %v322_v14 = vrot.slane %v295_v10, 1  ;;  %v393_v31 = vmax.f32 %v389_v20, 0.0 }
  0xbf   :  { %v306_v18 = vsel %vm302_vm1, %v301_v12, %v298_v59  ;;  %v303_v29 = vsel %vm302_vm1, %v300_v62, %v301_v12 }
  0xc0   :  { %v324_v19 = vsel %vm323_vm3, %v321_v58, %v322_v14  ;;  %v315_v22 = vsel %vm1355_vm5, %v306_v18, 0.0  ;;  %v327_v27 = vsel %vm323_vm3, %v322_v14, %v319_v15  ;;  %v397_v38 = vpack.c.bf16 %v393_v31, %v393_v31 }
  0xc1   :  { %v374_v23 = vadd.f32 %v373_v41, %v315_v22  ;;  %v385_v25 = vadd.f32 %v379_v21, %v324_v19  ;;  %v339_v33 = vsel %vm1370_vm6, %v327_v27, 0.0  ;;  %v1057_v27 = vld [vmem:[#allocation10 + $0x2] ss:$0 sm:$0xff] }
  0xc2   :  { %v442_v45 = vunpack.c.l.b16 %v397_v38 }
  0xc3   :  { %v383_v28 = vadd.f32 %v374_v23, %v326_v24  ;;  %v390_v35 = vadd.f32 %v1056_v6, %v385_v25  ;;  %v1058_v24 = vld [vmem:[#allocation10 + $0x1] ss:$0 sm:$0xff] }
  0xc4   :  { %v380_v30 = vpop.f32.mrf.mxu2 }
  0xc5   :  { %v381_v32 = vadd.f32 %v380_v30, %v303_v29  ;;  %v388_v34 = vadd.f32 %v1056_v6, %v383_v28  ;;  %v394_v43 = vmax.f32 %v390_v35, 0.0 }
  0xc7   :  { %v386_v36 = vadd.f32 %v381_v32, %v339_v33  ;;  %v392_v37 = vmax.f32 %v388_v34, 0.0  ;;  %v398_v49 = vpack.c.bf16 %v394_v43, %v394_v43 }
  0xc9   :  { %v391_v39 = vadd.f32 %v1056_v6, %v386_v36  ;;  %v396_v40 = vpack.c.bf16 %v392_v37, %v392_v37  ;;  %v1028_v41 = vpack.c.bf16 %v393_v31, %v392_v37  ;;  %v443_v51 = vunpack.c.l.b16 %v398_v49 }
  0xcb   :  { %v395_v13 = vmax.f32 %v391_v39, 0.0  ;;  %v441_v44 = vunpack.c.l.b16 %v396_v40  ;;  %1029 = vst [vmem:[#allocation11] sm:$0xff] %v1028_v41  }
  0xcc   :  { %v742_v55 = vpop.f32.mrf.mxu2 }
  0xcd   :  { %v1033_v46 = vpack.c.bf16 %v395_v13, %v394_v43  ;;  %v445_v47 = vpack.c.b16 %v442_v45, %v441_v44  ;;  %v399_v48 = vpack.c.bf16 %v395_v13, %v395_v13  ;;  %v743_v45 = vadd.f32 %v1057_v27, %v742_v55 }
  0xcf   :  { %1045 = vst [vmem:[#allocation11 + $0x8] sm:$0xff] %v1033_v46   ;;  %505 = vmatmul.bf16.vlgmr.msra.gmra.mxu3 %v445_v47  ;;  %589 = vmatmul.bf16.vlgmr.msrb.gmra.mxu0 %v445_v47  ;;  %v444_v50 = vunpack.c.l.b16 %v399_v48 }
  0xd0   :  { %680 = vmatmul.bf16.vlgmr.msrb.gmra.mxu1 %v445_v47  ;;  %780 = dma.vmem_to_hbm [thread:$0]  %s773_s23, 256, %s775_s21, [#allocation4], %s1238_s29, %s1238_s29, %s1239_s30  }
  0xd1   :  { %v446_v52 = vpack.c.b16 %v444_v50, %v443_v51 }
  0xd4   :  { %v744_v61 = vpop.f32.mrf.mxu2 }
  0xd5   :  { %v745_v40 = vadd.f32 %v1057_v27, %v744_v61 }
  0xdc   :  { %v747_v12 = vpop.f32.mrf.mxu2 }
  0xdd   :  { %v748_v31 = vadd.f32 %v1057_v27, %v747_v12 }
  0xdf   :  { %510 = vmatmul.bf16.gmra.mxu3 %v446_v52  ;;  %594 = vmatmul.bf16.gmra.mxu0 %v446_v52 }
  0xe0   :  { %685 = vmatmul.bf16.gmra.mxu1 %v446_v52 }
  0xe4   :  { %v749_v37 = vpop.f32.mrf.mxu2 }
  0xe5   :  { %v750_v13 = vadd.f32 %v1057_v27, %v749_v37 }
 0x14c   :  { %v590_v53 = vpop.f32.mrf.mxu0 }
 0x14d   :  { %v681_v54 = vpop.f32.mrf.mxu1  ;;  %v612_v20 = vrot.slane %v590_v53, 1 }
 0x152   :  { %v506_v56 = vpop.f32.mrf.mxu3 }
 0x153   :  { %v600_v1 = vrot.slane %v506_v56, 7 }
 0x154   :  { %v592_v58 = vpop.f32.mrf.mxu0 }
 0x155   :  { %v683_v59 = vpop.f32.mrf.mxu1  ;;  %v613_v3 = vrot.slane %v592_v58, 1 }
 0x157   :  { %v618_v38 = vsel %vm323_vm3, %v612_v20, %v613_v3 }
 0x15a   :  { %v508_v60 = vpop.f32.mrf.mxu3 }
 0x15b   :  { %v601_v63 = vrot.slane %v508_v60, 7 }
 0x15c   :  { %v595_v62 = vpop.f32.mrf.mxu0 }
 0x15d   :  { %v614_v0 = vrot.slane %v595_v62, 1  ;;  %v686_v4 = vpop.f32.mrf.mxu1  ;;  %v606_v6 = vsel %vm302_vm1, %v600_v1, %v601_v63 }
 0x15e   :  { %v684_v16 = vadd.f32 %v683_v59, %v606_v6 }
 0x15f   :  { %v617_v9 = vsel %vm323_vm3, %v613_v3, %v614_v0 }
 0x160   :  { %v621_v19 = vsel %vm1335_vm2, %v617_v9, 0.0 }
 0x161   :  { %v692_v23 = vadd.f32 %v684_v16, %v621_v19 }
 0x162   :  { %v511_v2 = vpop.f32.mrf.mxu3 }
 0x163   :  { %v602_v5 = vrot.slane %v511_v2, 7  ;;  %v697_v34 = vadd.f32 %v1058_v24, %v692_v23 }
 0x164   :  { %v597_v8 = vpop.f32.mrf.mxu0 }
 0x165   :  { %v605_v10 = vsel %vm302_vm1, %v601_v63, %v602_v5  ;;  %v615_v14 = vrot.slane %v597_v8, 1  ;;  %v688_v7 = vpop.f32.mrf.mxu1  ;;  %v753_v11 = vadd.f32 %v745_v40, %v697_v34 }
 0x166   :  { %v610_v15 = vsel %vm1349_vm4, %v605_v10, 0.0 }
 0x167   :  { %v687_v17 = vadd.f32 %v686_v4, %v610_v15  ;;  %v616_v18 = vsel %vm323_vm3, %v614_v0, %v615_v14  ;;  %v619_v28 = vsel %vm323_vm3, %v615_v14, %v612_v20  ;;  %v757_v26 = vmax.f32 %v753_v11, 0.0 }
 0x168   :  { %v623_v35 = vsel %vm1370_vm6, %v619_v28, 0.0 }
 0x169   :  { %v693_v21 = vadd.f32 %v687_v17, %v616_v18 }
 0x16a   :  { %v513_v22 = vpop.f32.mrf.mxu3 }
 0x16b   :  { %v603_v25 = vrot.slane %v513_v22, 7  ;;  %v698_v57 = vadd.f32 %v1058_v24, %v693_v21 }
 0x16d   :  { %v604_v29 = vsel %vm302_vm1, %v602_v5, %v603_v25  ;;  %v607_v30 = vsel %vm302_vm1, %v603_v25, %v600_v1  ;;  %v754_v44 = vadd.f32 %v748_v31, %v698_v57 }
 0x16e   :  { %v608_v32 = vsel %vm1355_vm5, %v607_v30, 0.0  ;;  %v689_v33 = vadd.f32 %v688_v7, %v604_v29 }
 0x16f   :  { %v682_v36 = vadd.f32 %v681_v54, %v608_v32  ;;  %v758_v49 = vmax.f32 %v754_v44, 0.0 }
 0x170   :  { %v694_v39 = vadd.f32 %v689_v33, %v623_v35 }
 0x171   :  { %v691_v41 = vadd.f32 %v682_v36, %v618_v38 }
 0x172   :  { %v699_v43 = vadd.f32 %v1058_v24, %v694_v39 }
 0x173   :  { %v696_v46 = vadd.f32 %v1058_v24, %v691_v41 }
 0x174   :  { %v755_v47 = vadd.f32 %v750_v13, %v699_v43 }
 0x175   :  { %v752_v48 = vadd.f32 %v743_v45, %v696_v46 }
 0x176   :  { %v759_v50 = vmax.f32 %v755_v47, 0.0 }
 0x177   :  { %v756_v42 = vmax.f32 %v752_v48, 0.0 }
 0x178   :  { %v1043_v51 = vpack.c.bf16 %v759_v50, %v758_v49 }
 0x179   :  { %v1038_v52 = vpack.c.bf16 %v757_v26, %v756_v42 }
 0x17a   :  { %1046 = vst [vmem:[#allocation12 + $0x8] sm:$0xff] %v1043_v51  }
 0x17b   :  { %1039 = vst [vmem:[#allocation12] sm:$0xff] %v1038_v52  }
 0x17c   :  { %793 = dma.vmem_to_hbm [thread:$0]  %s786_s24, 256, %s788_s27, [#allocation13], %s1238_s29, %s1238_s29, %s1239_s30  }
 0x17d   :  { %1233 = dma.done.wait [#allocation4], 256  }
 0x17e   :  { %1234 = vsyncadd [#allocation4], 4294967040 }
 0x17f   :  { %1235 = dma.done.wait [#allocation13], 256  }
 0x180   :  { %1236 = vsyncadd [#allocation13], 4294967040 }
 0x181   :  { %802 = vsyncpa [#allocation3], 1 }
 0x182   :  { %803 = vsyncpa [#allocation6], 1 }
 0x183   :  { %804 = vsyncpa [#allocation9], 1 }
 0x184   :  { %805 = vsyncpa [#allocation4], 1 }
 0x185   :  { %806 = vsyncpa [#allocation13], 1 }

</bundles_post_ra>
